<compile_context>
chip_gen: v5e
topology: v5e:2x2
jax: 0.10.0
libtpu: 0.0.40
codegen_flags: <defaults>
</compile_context>

<pallas_src>
import math
import jax
import jax.numpy as jnp
from jax import lax
from jax.experimental import pallas as pl
from jax.experimental.pallas import tpu as pltpu


def _round_up(a, b):
    return -(-a // b) * b


# ----------------------------------------------------------------------------- kernel
def link_predictor_kernel(xi_ref, xj_ref,
                          w0_ref, b0_ref,
                          w1_ref, b1_ref,
                          w2t_ref, b2t_ref,
                          o_ref):
    # elementwise "edge feature" product in the native input precision,
    # single cast to bf16 right before the MXU feed.
    x = (xi_ref[...] * xj_ref[...]).astype(jnp.bfloat16)

    # hidden layer 0: Linear + ReLU (bf16 matmul, f32 accumulate, f32 bias/ReLU)
    h = jnp.dot(x, w0_ref[...], preferred_element_type=jnp.float32) + b0_ref[...]
    h = jnp.maximum(h, 0.0).astype(jnp.bfloat16)

    # hidden layer 1: Linear + ReLU
    h = jnp.dot(h, w1_ref[...], preferred_element_type=jnp.float32) + b1_ref[...]
    h = jnp.maximum(h, 0.0).astype(jnp.bfloat16)

    # output layer, transposed for a lane-dense store:
    #   z = w2^T (O,H) contracted with h (tm,H) over H  ->  (O, tm)
    z = lax.dot_general(w2t_ref[...], h,
                        dimension_numbers=(((1,), (1,)), ((), ())),
                        preferred_element_type=jnp.float32)
    z = z + b2t_ref[...]                      # (O, 1) broadcast over lanes
    o_ref[...] = jax.nn.sigmoid(z).astype(o_ref.dtype)


# --------------------------------------------------------------------------- VMEM plan
def _scoped_vmem_request(tm_eff, C, H, O, in_itemsize):
    """Rough upper bound on the kernel's VMEM working set (lane-padded)."""
    lane = 128
    pad = lambda d: _round_up(max(int(d), 1), lane)
    tile_in = tm_eff * pad(C) * in_itemsize        # one lane-padded input tile
    io_bufs = 2 * 2 * tile_in                      # 2 inputs x double-buffered
    acts = tm_eff * pad(H) * (4 + 2) * 2           # f32 + bf16 hidden activations, 2 layers
    acts += tm_eff * pad(C) * 2                    # bf16 MXU feed of the product
    out = 2 * 8 * tm_eff * 4                       # (O, tm) f32 output, double-buffered
    w = (pad(C) + 2 * pad(H)) * pad(H) * 2         # bf16 weights (tiny, constant-indexed)
    return int((io_bufs + acts + out + w) * 1.5)   # headroom for compiler scratch


# ----------------------------------------------------------------------------- wrapper
def link_predictor(x_i, x_j, params, *, tm=8192):
    """params = (w0, b0, w1, b1, w2, b2) with w: [in, out] f32, b: [1, out] f32.

    Returns sigmoid((relu(relu((x_i*x_j) @ w0 + b0) @ w1 + b1)) @ w2 + b2)
    with shape [N, out].
    """
    w0, b0, w1, b1, w2, b2 = params
    N, C = x_i.shape
    H = w0.shape[1]
    O = w2.shape[1]

    # Weights are tiny: one-time bf16 cast / transpose. Biases stay f32.
    w0b = w0.astype(jnp.bfloat16)
    w1b = w1.astype(jnp.bfloat16)
    w2t = jnp.transpose(w2).astype(jnp.bfloat16)          # (O, H)
    b0r = jnp.reshape(b0, (1, H)).astype(jnp.float32)
    b1r = jnp.reshape(b1, (1, H)).astype(jnp.float32)
    b2t = jnp.reshape(b2, (O, 1)).astype(jnp.float32)

    # Row-tile selection:
    #  * tm multiple of 128 (lane-dense (O, tm) output block),
    #  * capped at ~half the rows (128-aligned) so the parallel grid has >= 2
    #    blocks -> both v7x TensorCores get work (free on v5e/v6e),
    #  * grid = cdiv(N, tm_eff): ragged tail handled by Pallas partial blocks,
    #    no wrapper-side padding copies. Garbage tail rows are row-local and
    #    never stored (masked partial output block).
    half = _round_up(max(pl.cdiv(N, 2), 1), 128)
    tm_eff = max(128, min(_round_up(tm, 128), half))
    grid = pl.cdiv(N, tm_eff)

    # Raise the scoped-VMEM limit only when the working set needs it (v5e's
    # default is 16 MiB); cap below v7x's 64 MiB physical per-TC VMEM.
    in_itemsize = jnp.dtype(x_i.dtype).itemsize
    req = _scoped_vmem_request(tm_eff, C, H, O, in_itemsize)
    cp_kwargs = dict(dimension_semantics=("parallel",))
    if req > 16 * 2**20:
        cp_kwargs["vmem_limit_bytes"] = min(req, 56 * 2**20)

    row_spec = pl.BlockSpec((tm_eff, C), lambda i: (i, 0))
    full_spec = lambda shp: pl.BlockSpec(shp, lambda i: (0, 0))

    out_t = pl.pallas_call(
        link_predictor_kernel,
        out_shape=jax.ShapeDtypeStruct((O, N), jnp.float32),
        grid_spec=pltpu.PrefetchScalarGridSpec(
            num_scalar_prefetch=0,
            grid=(grid,),
            in_specs=[
                row_spec,                     # x_i tile  (tm, C), native dtype
                row_spec,                     # x_j tile  (tm, C), native dtype
                full_spec(w0b.shape), full_spec(b0r.shape),
                full_spec(w1b.shape), full_spec(b1r.shape),
                full_spec(w2t.shape), full_spec(b2t.shape),
            ],
            out_specs=pl.BlockSpec((O, tm_eff), lambda i: (0, i)),   # lane-dense
        ),
        compiler_params=pltpu.CompilerParams(**cp_kwargs),
    )(x_i, x_j, w0b, b0r, w1b, b1r, w2t, b2t)

    # (O, N) -> (N, O)
    return jnp.transpose(out_t)


# --------------------------------------------------------------------------- utilities
def init_linear(key, fan_in, fan_out):
    # mimic torch.nn.Linear default init (kaiming-uniform-ish), deterministic;
    # weights stored as [in, out] (pre-transposed vs. PyTorch's [out, in]).
    kw, kb = jax.random.split(key)
    bound = 1.0 / math.sqrt(fan_in)
    w = jax.random.uniform(kw, (fan_in, fan_out), jnp.float32, -bound, bound)
    b = jax.random.uniform(kb, (1, fan_out), jnp.float32, -bound, bound)
    return w, b


def reference(x_i, x_j, params):
    w0, b0, w1, b1, w2, b2 = params
    x = x_i * x_j
    x = jnp.maximum(x @ w0 + b0, 0.0)
    x = jnp.maximum(x @ w1 + b1, 0.0)
    return jax.nn.sigmoid(x @ w2 + b2)


if __name__ == "__main__":
    # shapes consistent with the module:
    # in_channels=32, hidden_channels=64, out_channels=1, num_layers=3, dropout=0.0
    N, C, H, O = 300, 32, 64, 1   # N not tile-aligned: exercises the ragged tail

    key = jax.random.PRNGKey(0)
    k_xi, k_xj, k0, k1, k2 = jax.random.split(key, 5)

    x_i = jax.random.normal(k_xi, (N, C), jnp.float32)
    x_j = jax.random.normal(k_xj, (N, C), jnp.float32)

    w0, b0 = init_linear(k0, C, H)
    w1, b1 = init_linear(k1, H, H)
    w2, b2 = init_linear(k2, H, O)
    params = (w0, b0, w1, b1, w2, b2)

    # alpha / theta exist in the module but are unused in forward()
    # TODO(synk): dropout omitted (identity at inference, training=False)

    ref = reference(x_i, x_j, params)

    # default tile (capped at ~N/2 -> grid=2, one partial block)
    out_big = jax.block_until_ready(link_predictor(x_i, x_j, params))
    # small tile -> multi-step grid + ragged tail, same numerics
    out_small = jax.block_until_ready(link_predictor(x_i, x_j, params, tm=128))

    assert out_big.shape == (N, O)
    assert out_small.shape == (N, O)
    # bf16 weights/activations with f32 accumulation vs. f32 reference -> relaxed tol
    assert jnp.allclose(out_big, ref, atol=2e-2, rtol=2e-2)
    assert jnp.allclose(out_small, ref, atol=2e-2, rtol=2e-2)
    assert jnp.allclose(out_big, out_small, atol=1e-6, rtol=1e-6)

    print("KERNEL_OK")
</pallas_src>

<mosaic_0001>
module attributes {stable_mosaic.version = 11 : i64} {
  func.func @link_predictor_kernel(%arg0: i32, %arg1: memref<256x32xf32, #tpu.memory_space<vmem>>, %arg2: memref<256x32xf32, #tpu.memory_space<vmem>>, %arg3: memref<32x64xbf16, #tpu.memory_space<vmem>>, %arg4: memref<1x64xf32, #tpu.memory_space<vmem>>, %arg5: memref<64x64xbf16, #tpu.memory_space<vmem>>, %arg6: memref<1x64xf32, #tpu.memory_space<vmem>>, %arg7: memref<1x64xbf16, #tpu.memory_space<vmem>>, %arg8: memref<1x1xf32, #tpu.memory_space<vmem>>, %arg9: memref<1x256xf32, #tpu.memory_space<vmem>>) attributes {dimension_semantics = [#tpu.dimension_semantics<parallel>], iteration_bounds = array<i64: 2>, scalar_prefetch = 0 : i64, scratch_operands = 0 : i64, tpu.core_type = #tpu.core_type<tc>, window_params = [{transform_indices = @transform_0, window_bounds = array<i64: 256, 32>}, {transform_indices = @transform_1, window_bounds = array<i64: 256, 32>}, {pipeline_mode = #tpu.pipeline_mode<synchronous>, transform_indices = @transform_2, window_bounds = array<i64: 32, 64>}, {pipeline_mode = #tpu.pipeline_mode<synchronous>, transform_indices = @transform_3, window_bounds = array<i64: 1, 64>}, {pipeline_mode = #tpu.pipeline_mode<synchronous>, transform_indices = @transform_4, window_bounds = array<i64: 64, 64>}, {pipeline_mode = #tpu.pipeline_mode<synchronous>, transform_indices = @transform_5, window_bounds = array<i64: 1, 64>}, {pipeline_mode = #tpu.pipeline_mode<synchronous>, transform_indices = @transform_6, window_bounds = array<i64: 1, 64>}, {pipeline_mode = #tpu.pipeline_mode<synchronous>, transform_indices = @transform_7, window_bounds = array<i64: 1, 1>}, {transform_indices = @transform_8, window_bounds = array<i64: 1, 256>}]} {
    %c0 = arith.constant 0 : index
    %c0_0 = arith.constant 0 : index
    %0 = vector.load %arg1[%c0, %c0_0] : memref<256x32xf32, #tpu.memory_space<vmem>>, vector<256x32xf32>
    %c0_1 = arith.constant 0 : index
    %c0_2 = arith.constant 0 : index
    %1 = vector.load %arg2[%c0_1, %c0_2] : memref<256x32xf32, #tpu.memory_space<vmem>>, vector<256x32xf32>
    %2 = arith.mulf %0, %1 : vector<256x32xf32>
    %3 = arith.truncf %2 : vector<256x32xf32> to vector<256x32xbf16>
    %c0_3 = arith.constant 0 : index
    %c0_4 = arith.constant 0 : index
    %4 = vector.load %arg3[%c0_3, %c0_4] : memref<32x64xbf16, #tpu.memory_space<vmem>>, vector<32x64xbf16>
    %cst = arith.constant dense<0.000000e+00> : vector<256x64xf32>
    %5 = tpu.matmul %3, %4, %cst {dimension_numbers = #tpu.dot_dimension_numbers<[1], [0], [0], [1], [0, 0, 1, 1], [], []>} : vector<256x32xbf16>, vector<32x64xbf16>, vector<256x64xf32> -> vector<256x64xf32>
    %c0_5 = arith.constant 0 : index
    %c0_6 = arith.constant 0 : index
    %6 = vector.load %arg4[%c0_5, %c0_6] : memref<1x64xf32, #tpu.memory_space<vmem>>, vector<1x64xf32>
    %7 = vector.broadcast %6 : vector<1x64xf32> to vector<256x64xf32>
    %8 = arith.addf %5, %7 : vector<256x64xf32>
    %cst_7 = arith.constant 0.000000e+00 : f32
    %9 = vector.broadcast %cst_7 : f32 to vector<256x64xf32>
    %10 = arith.maximumf %8, %9 : vector<256x64xf32>
    %11 = arith.truncf %10 : vector<256x64xf32> to vector<256x64xbf16>
    %c0_8 = arith.constant 0 : index
    %c0_9 = arith.constant 0 : index
    %12 = vector.load %arg5[%c0_8, %c0_9] : memref<64x64xbf16, #tpu.memory_space<vmem>>, vector<64x64xbf16>
    %cst_10 = arith.constant dense<0.000000e+00> : vector<256x64xf32>
    %13 = tpu.matmul %11, %12, %cst_10 {dimension_numbers = #tpu.dot_dimension_numbers<[1], [0], [0], [1], [0, 0, 1, 1], [], []>} : vector<256x64xbf16>, vector<64x64xbf16>, vector<256x64xf32> -> vector<256x64xf32>
    %c0_11 = arith.constant 0 : index
    %c0_12 = arith.constant 0 : index
    %14 = vector.load %arg6[%c0_11, %c0_12] : memref<1x64xf32, #tpu.memory_space<vmem>>, vector<1x64xf32>
    %15 = vector.broadcast %14 : vector<1x64xf32> to vector<256x64xf32>
    %16 = arith.addf %13, %15 : vector<256x64xf32>
    %cst_13 = arith.constant 0.000000e+00 : f32
    %17 = vector.broadcast %cst_13 : f32 to vector<256x64xf32>
    %18 = arith.maximumf %16, %17 : vector<256x64xf32>
    %19 = arith.truncf %18 : vector<256x64xf32> to vector<256x64xbf16>
    %c0_14 = arith.constant 0 : index
    %c0_15 = arith.constant 0 : index
    %20 = vector.load %arg7[%c0_14, %c0_15] : memref<1x64xbf16, #tpu.memory_space<vmem>>, vector<1x64xbf16>
    %cst_16 = arith.constant dense<0.000000e+00> : vector<1x256xf32>
    %21 = tpu.matmul %20, %19, %cst_16 {dimension_numbers = #tpu.dot_dimension_numbers<[1], [1], [0], [0], [0, 0, 1, 0], [], []>} : vector<1x64xbf16>, vector<256x64xbf16>, vector<1x256xf32> -> vector<1x256xf32>
    %c0_17 = arith.constant 0 : index
    %c0_18 = arith.constant 0 : index
    %22 = vector.load %arg8[%c0_17, %c0_18] : memref<1x1xf32, #tpu.memory_space<vmem>>, vector<1x1xf32>
    %23 = vector.broadcast %22 : vector<1x1xf32> to vector<1x256xf32>
    %24 = arith.addf %21, %23 : vector<1x256xf32>
    %25 = arith.negf %24 : vector<1x256xf32>
    %26 = math.exp %25 : vector<1x256xf32>
    %cst_19 = arith.constant 1.000000e+00 : f32
    %27 = vector.broadcast %cst_19 : f32 to vector<1x256xf32>
    %28 = arith.addf %27, %26 : vector<1x256xf32>
    %29 = arith.divf %27, %28 : vector<1x256xf32>
    %c0_20 = arith.constant 0 : index
    %c0_21 = arith.constant 0 : index
    %30 = vector.load %arg9[%c0_20, %c0_21] : memref<1x256xf32, #tpu.memory_space<vmem>>, vector<1x256xf32>
    tpu.vector_store %arg9[%c0_20, %c0_21], %29 {strides = array<i32>} : memref<1x256xf32, #tpu.memory_space<vmem>>, vector<1x256xf32>,
    return
  }
  func.func @transform_0(%arg0: i32) -> (i32, i32) {
    %c0_i32 = arith.constant 0 : i32
    %c0_i32_0 = arith.constant 0 : i32
    return %arg0, %c0_i32 : i32, i32
  }
  func.func @transform_1(%arg0: i32) -> (i32, i32) {
    %c0_i32 = arith.constant 0 : i32
    %c0_i32_0 = arith.constant 0 : i32
    return %arg0, %c0_i32 : i32, i32
  }
  func.func @transform_2(%arg0: i32) -> (i32, i32) {
    %c0_i32 = arith.constant 0 : i32
    %c0_i32_0 = arith.constant 0 : i32
    %c0_i32_1 = arith.constant 0 : i32
    return %c0_i32, %c0_i32_0 : i32, i32
  }
  func.func @transform_3(%arg0: i32) -> (i32, i32) {
    %c0_i32 = arith.constant 0 : i32
    %c0_i32_0 = arith.constant 0 : i32
    %c0_i32_1 = arith.constant 0 : i32
    return %c0_i32, %c0_i32_0 : i32, i32
  }
  func.func @transform_4(%arg0: i32) -> (i32, i32) {
    %c0_i32 = arith.constant 0 : i32
    %c0_i32_0 = arith.constant 0 : i32
    %c0_i32_1 = arith.constant 0 : i32
    return %c0_i32, %c0_i32_0 : i32, i32
  }
  func.func @transform_5(%arg0: i32) -> (i32, i32) {
    %c0_i32 = arith.constant 0 : i32
    %c0_i32_0 = arith.constant 0 : i32
    %c0_i32_1 = arith.constant 0 : i32
    return %c0_i32, %c0_i32_0 : i32, i32
  }
  func.func @transform_6(%arg0: i32) -> (i32, i32) {
    %c0_i32 = arith.constant 0 : i32
    %c0_i32_0 = arith.constant 0 : i32
    %c0_i32_1 = arith.constant 0 : i32
    return %c0_i32, %c0_i32_0 : i32, i32
  }
  func.func @transform_7(%arg0: i32) -> (i32, i32) {
    %c0_i32 = arith.constant 0 : i32
    %c0_i32_0 = arith.constant 0 : i32
    %c0_i32_1 = arith.constant 0 : i32
    return %c0_i32, %c0_i32_0 : i32, i32
  }
  func.func @transform_8(%arg0: i32) -> (i32, i32) {
    %c0_i32 = arith.constant 0 : i32
    %c0_i32_0 = arith.constant 0 : i32
    return %c0_i32, %arg0 : i32, i32
  }
}

</mosaic_0001>

<bundles_post_ra>
// kernel: tpu_custom_call.1
= control target key start
LH: loop header
LB: loop body
LE: loop exit
PB: predicated region body
PF: predicated region fallthrough
CT: control target
= control target key end

     0   :  { %s1751_s0 = inlined_call_operand.vmem [shape: f32[300,32], index: 0, kind: input, shape index: {}]   ;;  %s1752_s1 = inlined_call_operand.vmem [shape: f32[300,32], index: 1, kind: input, shape index: {}]   ;;  %s1753_s2 = inlined_call_operand.vmem [shape: bf16[32,64], index: 2, kind: input, shape index: {}]   ;;  %s1754_s3 = inlined_call_operand.vmem [shape: f32[1,64], index: 3, kind: input, shape index: {}]   ;;  %s1755_s4 = inlined_call_operand.vmem [shape: bf16[64,64], index: 4, kind: input, shape index: {}]   ;;  %s1756_s5 = inlined_call_operand.vmem [shape: f32[1,64], index: 5, kind: input, shape index: {}]   ;;  %s1757_s6 = inlined_call_operand.vmem [shape: bf16[1,64], index: 6, kind: input, shape index: {}]   ;;  %s1758_s7 = inlined_call_operand.<no memory space> [shape: f32[1,1], index: 7, kind: input, shape index: {}]   ;;  %s1759_s8 = inlined_call_operand.hbm [shape: f32[1,300], index: 8, kind: output, shape index: {}]  }
   0x1   :  { %v13_v0 = vstv %s1758_s7 }
   0x2   :  { %14 = vst [vmem:[#allocation2] sm:$0x1] %v13_v0 }
   0x3   :  { %15 = vsyncpa [#allocation4], 0 }
   0x4   :  { %17 = vsyncpa [#allocation4 + $0x1], 0  ;;  %s1402_s29 = smov 0   ;;  %s1404_s30 = smov 0  }
   0x5   :  { %s1406_s9 = smov 0   ;;  %s1408_s10 = smov 0  }
   0x6 LB: > { %s1423_s7 = sadd.s32 4294967295, %s1350_s10   ;;  %s1141_s11 = sadd.s32 4294967294, %s1350_s10   ;;  %s1350_s10 = sphi %s1408_s10, %s1765_s10   ;;  %s1346_s9 = sphi %s1406_s9, %s1764_s9   ;;  %s1342_s30 = sphi %s1404_s30, %s1763_s30   ;;  %s1338_s29 = sphi %s1402_s29, %s1762_s29  }
   0x7   : > { %s1427_s12 = sadd.s32 1, %s1350_s10   ;;  %s208_s13 = sadd.s32 1, %s1346_s9 }
   0x8   : > { %s205_s14 = ssub.s32 %s1350_s10, %s1427_s12  ;;  %p218_p0 = scmp.ne.s32.totalorder %s1346_s9, %s1342_s30 }
   0x9   : > { %p206_p1 = scmp.eq.s32.totalorder %s205_s14, 0  ;;  %p219_p2 = scmp.eq.s32.totalorder %s1423_s7, 1 }
   0xa   : > { %p224_p3 = scmp.ne.s32.totalorder %s1342_s30, %s1338_s29  ;;  %p225_p4 = scmp.eq.s32.totalorder %s1141_s11, 1 }
   0xb   : > { %s1438_s15 = scalar_select %p206_p1, %s1346_s9, %s208_s13  }
   0xc   : > { %p1440_p5 = por %p219_p2, %p218_p0  ;;  %p1444_p6 = por %p225_p4, %p224_p3 }
   0xd   : > { %p1144_p7 = scmp.ge.s32.totalorder %s1350_s10, 1  ;;  %p295_p8 = scmp.lt.s32.totalorder %s1350_s10, 3 }
   0xf   : > { %p296_p9 = pnand %p1144_p7, %p295_p8 }
  0x10   : > { %s1146_s20 = sshll.u32 (!%p296_p9), %s1423_s7, 5  ;;  %s339_s13 = sand.u32 (!%p296_p9), 1, %s1342_s30  }
  0x11   : > { %299 = sbr.rel (%p296_p9) target bundleno = 680 (0x2a8), region = 52  ;;  %p347_p10 = scmp.lt.s32.totalorder (!%p296_p9), %s1146_s20, 37 }
  0x12   : > { %s1145_s14 = sshll.u32 (!%p296_p9), %s339_s13, 1  ;;  %s1696_s19 = scalar_lea.sflag (!%p296_p9), [#allocation4], %s339_s13 }
  0x13   : > { %s341_s18 = scalar_lea.vmem (!%p296_p9), [#allocation3], %s1145_s14 }
  0x16   : > { %v1216_v1 = vld [vmem:[%s1753_s2 + $0x8] sm:$0xff]  ;;  %v1215_v2 = vld [vmem:[%s1753_s2] sm:$0xff]  ;;  %s1767_s20 = smov (!%p347_p10, %s1146_s20), 37  ;;  %vm507_vm0 = vcmask 261120   ;;  %vm729_vm1 = vcmask 523264   ;;  %vm1041_vm9 = vcmask 1040384  }
  0x17   : > { %562 = vmatpush.bf16.msra.mxu0 %v1216_v1  ;;  %1221 = vmatpush.bf16.msra.mxu3 %v1216_v1  ;;  %s1147_s23 = sshll.u32 %s1767_s20, 3  ;;  %s1211_s20 = sshll.u32 (%p1440_p5), %s1423_s7, 1 }
  0x18   : > { %s1460_s26 = scalar_lea.vmem %s1751_s0, %s1147_s23  ;;  %s1465_s11 = scalar_lea.vmem %s1752_s1, %s1147_s23 }
  0x19   : > { %v375_v3 = vld [vmem:[%s1460_s26] sm:$0xff]  ;;  %v376_v4 = vld [vmem:[%s1460_s26 + $0x8] sm:$0xff]  ;;  %v393_v8 = vld [vmem:[%s1460_s26 + $0x90] sm:$0xff]  ;;  %s1058_s21 = ssub.s32 (%p1440_p5), 3, %s1211_s20 }
  0x1a   : > { %v407_v5 = vld [vmem:[%s1465_s11] sm:$0xff]  ;;  %v408_v6 = vld [vmem:[%s1465_s11 + $0x8] sm:$0xff]  ;;  %v394_v9 = vld [vmem:[%s1460_s26 + $0x98] sm:$0xff]  ;;  %p1059_p11 = scmp.lt.s32.totalorder (%p1440_p5), %s1058_s21, 2 }
  0x1b   : > { %563 = vmatpush.bf16.msra.mxu0 %v1215_v2  ;;  %1222 = vmatpush.bf16.msra.mxu3 %v1215_v2  ;;  %v439_v7 = vmul.f32 %v407_v5, %v375_v3  ;;  %v440_v10 = vmul.f32 %v408_v6, %v376_v4  ;;  %v425_v11 = vld [vmem:[%s1465_s11 + $0x90] sm:$0xff]  ;;  %v426_v12 = vld [vmem:[%s1465_s11 + $0x98] sm:$0xff]  ;;  %v395_v21 = vld [vmem:[%s1460_s26 + $0xa0] sm:$0xff] }
  0x1c   : > { %v457_v13 = vmul.f32 %v425_v11, %v393_v8  ;;  %v458_v14 = vmul.f32 %v426_v12, %v394_v9  ;;  %v377_v17 = vld [vmem:[%s1460_s26 + $0x10] sm:$0xff]  ;;  %v378_v18 = vld [vmem:[%s1460_s26 + $0x18] sm:$0xff]  ;;  %v396_v22 = vld [vmem:[%s1460_s26 + $0xa8] sm:$0xff] }
  0x1d   : > { %v471_v15 = vpack.c.bf16 %v440_v10, %v439_v7  ;;  %v409_v19 = vld [vmem:[%s1465_s11 + $0x10] sm:$0xff]  ;;  %v410_v20 = vld [vmem:[%s1465_s11 + $0x18] sm:$0xff]  ;;  %v427_v23 = vld [vmem:[%s1465_s11 + $0xa0] sm:$0xff] }
  0x1e   : > { %v480_v16 = vpack.c.bf16 %v458_v14, %v457_v13  ;;  %v428_v24 = vld [vmem:[%s1465_s11 + $0xa8] sm:$0xff]  ;;  %v441_v25 = vmul.f32 %v409_v19, %v377_v17  ;;  %v442_v26 = vmul.f32 %v410_v20, %v378_v18  ;;  %v459_v27 = vmul.f32 %v427_v23, %v395_v21  ;;  %v379_v31 = vld [vmem:[%s1460_s26 + $0x20] sm:$0xff]  ;;  %v397_v35 = vld [vmem:[%s1460_s26 + $0xb0] sm:$0xff] }
  0x1f   : > { %1158 = vmatmul.msk.bf16.vlgmr.msra.gmra.mxu0 %vm507_vm0, %v471_v15  ;;  %v460_v28 = vmul.f32 %v428_v24, %v396_v22  ;;  %v380_v32 = vld [vmem:[%s1460_s26 + $0x28] sm:$0xff]  ;;  %v411_v33 = vld [vmem:[%s1465_s11 + $0x20] sm:$0xff]  ;;  %v398_v36 = vld [vmem:[%s1460_s26 + $0xb8] sm:$0xff] }
  0x20   : > { %1167 = vmatmul.msk.bf16.vlgmr.msra.gmra.mxu3 %vm507_vm0, %v480_v16  ;;  %v472_v29 = vpack.c.bf16 %v442_v26, %v441_v25  ;;  %v412_v34 = vld [vmem:[%s1465_s11 + $0x28] sm:$0xff]  ;;  %v429_v37 = vld [vmem:[%s1465_s11 + $0xb0] sm:$0xff]  ;;  %v430_v38 = vld [vmem:[%s1465_s11 + $0xb8] sm:$0xff]  ;;  %v443_v39 = vmul.f32 %v411_v33, %v379_v31 }
  0x21   : > { %v481_v30 = vpack.c.bf16 %v460_v28, %v459_v27  ;;  %v444_v40 = vmul.f32 %v412_v34, %v380_v32  ;;  %v461_v41 = vmul.f32 %v429_v37, %v397_v35  ;;  %v462_v42 = vmul.f32 %v430_v38, %v398_v36  ;;  %v381_v45 = vld [vmem:[%s1460_s26 + $0x30] sm:$0xff]  ;;  %v382_v46 = vld [vmem:[%s1460_s26 + $0x38] sm:$0xff]  ;;  %v399_v49 = vld [vmem:[%s1460_s26 + $0xc0] sm:$0xff] }
  0x22   : > { %v413_v47 = vld [vmem:[%s1465_s11 + $0x30] sm:$0xff]  ;;  %v414_v48 = vld [vmem:[%s1465_s11 + $0x38] sm:$0xff]  ;;  %v400_v50 = vld [vmem:[%s1460_s26 + $0xc8] sm:$0xff] }
  0x23   : > { %v473_v43 = vpack.c.bf16 %v444_v40, %v443_v39  ;;  %v482_v44 = vpack.c.bf16 %v462_v42, %v461_v41  ;;  %v431_v51 = vld [vmem:[%s1465_s11 + $0xc0] sm:$0xff]  ;;  %v432_v52 = vld [vmem:[%s1465_s11 + $0xc8] sm:$0xff]  ;;  %v445_v53 = vmul.f32 %v413_v47, %v381_v45  ;;  %v446_v54 = vmul.f32 %v414_v48, %v382_v46  ;;  %v401_v63 = vld [vmem:[%s1460_s26 + $0xd0] sm:$0xff] }
  0x24   : > { %v463_v55 = vmul.f32 %v431_v51, %v399_v49  ;;  %v464_v56 = vmul.f32 %v432_v52, %v400_v50  ;;  %v383_v59 = vld [vmem:[%s1460_s26 + $0x40] sm:$0xff]  ;;  %v384_v60 = vld [vmem:[%s1460_s26 + $0x48] sm:$0xff]  ;;  %v402_v0 = vld [vmem:[%s1460_s26 + $0xd8] sm:$0xff] }
  0x25   : > { %v474_v57 = vpack.c.bf16 %v446_v54, %v445_v53  ;;  %v415_v61 = vld [vmem:[%s1465_s11 + $0x40] sm:$0xff]  ;;  %v416_v62 = vld [vmem:[%s1465_s11 + $0x48] sm:$0xff]  ;;  %v433_v1 = vld [vmem:[%s1465_s11 + $0xd0] sm:$0xff] }
  0x26   : > { %v483_v58 = vpack.c.bf16 %v464_v56, %v463_v55  ;;  %v434_v2 = vld [vmem:[%s1465_s11 + $0xd8] sm:$0xff]  ;;  %v447_v3 = vmul.f32 %v415_v61, %v383_v59  ;;  %v448_v4 = vmul.f32 %v416_v62, %v384_v60  ;;  %v465_v5 = vmul.f32 %v433_v1, %v401_v63  ;;  %v385_v9 = vld [vmem:[%s1460_s26 + $0x50] sm:$0xff]  ;;  %v403_v13 = vld [vmem:[%s1460_s26 + $0xe0] sm:$0xff] }
  0x27   : > { %v466_v6 = vmul.f32 %v434_v2, %v402_v0  ;;  %v386_v10 = vld [vmem:[%s1460_s26 + $0x58] sm:$0xff]  ;;  %v417_v11 = vld [vmem:[%s1465_s11 + $0x50] sm:$0xff]  ;;  %v404_v14 = vld [vmem:[%s1460_s26 + $0xe8] sm:$0xff] }
  0x28   : > { %v475_v7 = vpack.c.bf16 %v448_v4, %v447_v3  ;;  %v418_v12 = vld [vmem:[%s1465_s11 + $0x58] sm:$0xff]  ;;  %v435_v15 = vld [vmem:[%s1465_s11 + $0xe0] sm:$0xff]  ;;  %v436_v16 = vld [vmem:[%s1465_s11 + $0xe8] sm:$0xff]  ;;  %v449_v17 = vmul.f32 %v417_v11, %v385_v9 }
  0x29   : > { %v484_v8 = vpack.c.bf16 %v466_v6, %v465_v5  ;;  %v450_v18 = vmul.f32 %v418_v12, %v386_v10  ;;  %v467_v19 = vmul.f32 %v435_v15, %v403_v13  ;;  %v468_v20 = vmul.f32 %v436_v16, %v404_v14  ;;  %v387_v23 = vld [vmem:[%s1460_s26 + $0x60] sm:$0xff]  ;;  %v388_v24 = vld [vmem:[%s1460_s26 + $0x68] sm:$0xff]  ;;  %v405_v27 = vld [vmem:[%s1460_s26 + $0xf0] sm:$0xff] }
  0x2a   : > { %v419_v25 = vld [vmem:[%s1465_s11 + $0x60] sm:$0xff]  ;;  %v420_v26 = vld [vmem:[%s1465_s11 + $0x68] sm:$0xff]  ;;  %v406_v28 = vld [vmem:[%s1460_s26 + $0xf8] sm:$0xff] }
  0x2b   : > { %v476_v21 = vpack.c.bf16 %v450_v18, %v449_v17  ;;  %v485_v22 = vpack.c.bf16 %v468_v20, %v467_v19  ;;  %v451_v31 = vmul.f32 %v419_v25, %v387_v23  ;;  %v452_v32 = vmul.f32 %v420_v26, %v388_v24  ;;  %v1220_v36 = vld [vmem:[%s1755_s4 + $0x18] sm:$0xff]  ;;  %v1219_v38 = vld [vmem:[%s1755_s4 + $0x10] sm:$0xff]  ;;  %v1218_v40 = vld [vmem:[%s1755_s4 + $0x8] sm:$0xff] }
  0x2c   : > { %782 = vmatpush.bf16.msra.mxu1 %v1220_v36  ;;  %1223 = vmatpush.bf16.msra.mxu2 %v1220_v36  ;;  %v389_v39 = vld [vmem:[%s1460_s26 + $0x70] sm:$0xff]  ;;  %v390_v41 = vld [vmem:[%s1460_s26 + $0x78] sm:$0xff]  ;;  %v1217_v46 = vld [vmem:[%s1755_s4] sm:$0xff] }
  0x2d   : > { %v477_v35 = vpack.c.bf16 %v452_v32, %v451_v31  ;;  %v421_v42 = vld [vmem:[%s1465_s11 + $0x70] sm:$0xff]  ;;  %v391_v48 = vld [vmem:[%s1460_s26 + $0x80] sm:$0xff]  ;;  %v392_v49 = vld [vmem:[%s1460_s26 + $0x88] sm:$0xff] }
  0x2e   : > { %v423_v50 = vld [vmem:[%s1465_s11 + $0x80] sm:$0xff]  ;;  %v424_v51 = vld [vmem:[%s1465_s11 + $0x88] sm:$0xff] }
  0x2f   : > { %1159 = vmatmul.msk.bf16.gmra.mxu0 %vm507_vm0, %v472_v29  ;;  %v437_v29 = vld [vmem:[%s1465_s11 + $0xf0] sm:$0xff]  ;;  %v455_v52 = vmul.f32 %v423_v50, %v391_v48  ;;  %v456_v53 = vmul.f32 %v424_v51, %v392_v49  ;;  %v1561_v56 = vld [vmem:[%s1754_s3] ss:$0 sm:$0xff] }
  0x30   : > { %1168 = vmatmul.msk.bf16.gmra.mxu3 %vm507_vm0, %v481_v30  ;;  %v438_v30 = vld [vmem:[%s1465_s11 + $0xf8] sm:$0xff]  ;;  %v469_v33 = vmul.f32 %v437_v29, %v405_v27  ;;  %783 = vmatpush.bf16.msra.mxu1 %v1219_v38 }
  0x31   : > { %v470_v34 = vmul.f32 %v438_v30, %v406_v28  ;;  %1224 = vmatpush.bf16.msra.mxu2 %v1219_v38  ;;  %v479_v54 = vpack.c.bf16 %v456_v53, %v455_v52 }
  0x33   : > { %v486_v37 = vpack.c.bf16 %v470_v34, %v469_v33 }
  0x34   : > { %784 = vmatpush.bf16.msra.mxu1 %v1218_v40 }
  0x35   : > { %1225 = vmatpush.bf16.msra.mxu2 %v1218_v40 }
  0x38   : > { %785 = vmatpush.bf16.msra.mxu1 %v1217_v46 }
  0x39   : > { %1226 = vmatpush.bf16.msra.mxu2 %v1217_v46 }
  0x3f   : > { %1160 = vmatmul.msk.bf16.gmra.mxu0 %vm507_vm0, %v473_v43  ;;  %v422_v43 = vld [vmem:[%s1465_s11 + $0x78] sm:$0xff] }
  0x40   : > { %1169 = vmatmul.msk.bf16.gmra.mxu3 %vm507_vm0, %v482_v44  ;;  %v453_v44 = vmul.f32 %v421_v42, %v389_v39  ;;  %v454_v45 = vmul.f32 %v422_v43, %v390_v41 }
  0x42   : > { %v478_v47 = vpack.c.bf16 %v454_v45, %v453_v44 }
  0x4f   : > { %1161 = vmatmul.msk.bf16.gmra.mxu0 %vm507_vm0, %v474_v57 }
  0x50   : > { %1170 = vmatmul.msk.bf16.gmra.mxu3 %vm507_vm0, %v483_v58 }
  0x5f   : > { %1162 = vmatmul.msk.bf16.gmra.mxu0 %vm507_vm0, %v475_v7 }
  0x60   : > { %1171 = vmatmul.msk.bf16.gmra.mxu3 %vm507_vm0, %v484_v8 }
  0x6f   : > { %1163 = vmatmul.msk.bf16.gmra.mxu0 %vm507_vm0, %v476_v21 }
  0x70   : > { %1172 = vmatmul.msk.bf16.gmra.mxu3 %vm507_vm0, %v485_v22 }
  0x7f   : > { %1164 = vmatmul.msk.bf16.gmra.mxu0 %vm507_vm0, %v477_v35 }
  0x80   : > { %1173 = vmatmul.msk.bf16.gmra.mxu3 %vm507_vm0, %v486_v37 }
  0x8f   : > { %1165 = vmatmul.msk.bf16.gmra.mxu0 %vm507_vm0, %v478_v47 }
  0x9c   : > { %v565_v55 = vpop.f32.mrf.mxu0 }
  0x9d   : > { %v566_v57 = vadd.f32 %v1561_v56, %v565_v55 }
  0x9f   : > { %1166 = vmatmul.msk.bf16.gmra.mxu0 %vm507_vm0, %v479_v54  ;;  %v645_v61 = vmax.f32 %v566_v57, 0.0 }
  0xa3   : > { %v610_v58 = vpop.f32.mrf.mxu3 }
  0xa4   : > { %v567_v59 = vpop.f32.mrf.mxu0  ;;  %v611_v0 = vadd.f32 %v1561_v56, %v610_v58 }
  0xa5   : > { %v568_v60 = vadd.f32 %v1561_v56, %v567_v59 }
  0xa6   : > { %v663_v4 = vmax.f32 %v611_v0, 0.0 }
  0xa7   : > { %v646_v62 = vmax.f32 %v568_v60, 0.0 }
  0xa9   : > { %v677_v63 = vpack.c.bf16 %v646_v62, %v645_v61 }
  0xab   : > { %v612_v1 = vpop.f32.mrf.mxu3  ;;  %1190 = vmatmul.msk.bf16.vlgmr.msra.gmra.mxu1 %vm729_vm1, %v677_v63 }
  0xac   : > { %v613_v2 = vadd.f32 %v1561_v56, %v612_v1  ;;  %v570_v3 = vpop.f32.mrf.mxu0 }
  0xad   : > { %v571_v7 = vadd.f32 %v1561_v56, %v570_v3 }
  0xae   : > { %v664_v5 = vmax.f32 %v613_v2, 0.0 }
  0xaf   : > { %v647_v11 = vmax.f32 %v571_v7, 0.0 }
  0xb0   : > { %v1569_v6 = vpack.c.bf16 %v664_v5, %v663_v4 }
  0xb3   : > { %v615_v8 = vpop.f32.mrf.mxu3 }
  0xb4   : > { %v572_v9 = vpop.f32.mrf.mxu0  ;;  %v616_v14 = vadd.f32 %v1561_v56, %v615_v8 }
  0xb5   : > { %v573_v10 = vadd.f32 %v1561_v56, %v572_v9 }
  0xb6   : > { %v665_v18 = vmax.f32 %v616_v14, 0.0 }
  0xb7   : > { %v648_v12 = vmax.f32 %v573_v10, 0.0 }
  0xb9   : > { %v678_v13 = vpack.c.bf16 %v648_v12, %v647_v11 }
  0xbb   : > { %v617_v15 = vpop.f32.mrf.mxu3  ;;  %1191 = vmatmul.msk.bf16.gmra.mxu1 %vm729_vm1, %v678_v13 }
  0xbc   : > { %v618_v16 = vadd.f32 %v1561_v56, %v617_v15  ;;  %v575_v17 = vpop.f32.mrf.mxu0 }
  0xbd   : > { %v576_v21 = vadd.f32 %v1561_v56, %v575_v17 }
  0xbe   : > { %v666_v19 = vmax.f32 %v618_v16, 0.0 }
  0xbf   : > { %v649_v25 = vmax.f32 %v576_v21, 0.0 }
  0xc0   : > { %v687_v20 = vpack.c.bf16 %v666_v19, %v665_v18 }
  0xc2   : > { %1200 = vmatmul.msk.bf16.vlgmr.msra.gmra.mxu2 %vm729_vm1, %v687_v20 }
  0xc3   : > { %v620_v22 = vpop.f32.mrf.mxu3 }
  0xc4   : > { %v577_v23 = vpop.f32.mrf.mxu0  ;;  %v621_v28 = vadd.f32 %v1561_v56, %v620_v22 }
  0xc5   : > { %v578_v24 = vadd.f32 %v1561_v56, %v577_v23 }
  0xc6   : > { %v667_v32 = vmax.f32 %v621_v28, 0.0 }
  0xc7   : > { %v650_v26 = vmax.f32 %v578_v24, 0.0 }
  0xc9   : > { %v679_v27 = vpack.c.bf16 %v650_v26, %v649_v25 }
  0xcb   : > { %v622_v29 = vpop.f32.mrf.mxu3  ;;  %1192 = vmatmul.msk.bf16.gmra.mxu1 %vm729_vm1, %v679_v27 }
  0xcc   : > { %v623_v30 = vadd.f32 %v1561_v56, %v622_v29  ;;  %v580_v31 = vpop.f32.mrf.mxu0 }
  0xcd   : > { %v581_v35 = vadd.f32 %v1561_v56, %v580_v31 }
  0xce   : > { %v668_v33 = vmax.f32 %v623_v30, 0.0 }
  0xcf   : > { %v651_v39 = vmax.f32 %v581_v35, 0.0 }
  0xd0   : > { %v688_v34 = vpack.c.bf16 %v668_v33, %v667_v32 }
  0xd2   : > { %1201 = vmatmul.msk.bf16.gmra.mxu2 %vm729_vm1, %v688_v34 }
  0xd3   : > { %v625_v36 = vpop.f32.mrf.mxu3 }
  0xd4   : > { %v582_v37 = vpop.f32.mrf.mxu0  ;;  %v626_v42 = vadd.f32 %v1561_v56, %v625_v36 }
  0xd5   : > { %v583_v38 = vadd.f32 %v1561_v56, %v582_v37 }
  0xd6   : > { %v669_v46 = vmax.f32 %v626_v42, 0.0 }
  0xd7   : > { %v652_v40 = vmax.f32 %v583_v38, 0.0 }
  0xd9   : > { %v680_v41 = vpack.c.bf16 %v652_v40, %v651_v39 }
  0xdb   : > { %v627_v43 = vpop.f32.mrf.mxu3  ;;  %1193 = vmatmul.msk.bf16.gmra.mxu1 %vm729_vm1, %v680_v41 }
  0xdc   : > { %v628_v44 = vadd.f32 %v1561_v56, %v627_v43  ;;  %v585_v45 = vpop.f32.mrf.mxu0  ;;  %v1615_v43 = vld [vmem:[%s1756_s5] ss:$0 sm:$0xff] }
  0xdd   : > { %v586_v49 = vadd.f32 %v1561_v56, %v585_v45 }
  0xde   : > { %v670_v47 = vmax.f32 %v628_v44, 0.0 }
  0xdf   : > { %v653_v53 = vmax.f32 %v586_v49, 0.0 }
  0xe0   : > { %v689_v48 = vpack.c.bf16 %v670_v47, %v669_v46 }
  0xe2   : > { %1202 = vmatmul.msk.bf16.gmra.mxu2 %vm729_vm1, %v689_v48 }
  0xe3   : > { %v630_v50 = vpop.f32.mrf.mxu3 }
  0xe4   : > { %v587_v51 = vpop.f32.mrf.mxu0  ;;  %v631_v57 = vadd.f32 %v1561_v56, %v630_v50 }
  0xe5   : > { %v588_v52 = vadd.f32 %v1561_v56, %v587_v51 }
  0xe6   : > { %v671_v61 = vmax.f32 %v631_v57, 0.0 }
  0xe7   : > { %v654_v54 = vmax.f32 %v588_v52, 0.0 }
  0xe9   : > { %v681_v55 = vpack.c.bf16 %v654_v54, %v653_v53 }
  0xeb   : > { %v632_v58 = vpop.f32.mrf.mxu3  ;;  %1194 = vmatmul.msk.bf16.gmra.mxu1 %vm729_vm1, %v681_v55 }
  0xec   : > { %v633_v59 = vadd.f32 %v1561_v56, %v632_v58  ;;  %v590_v60 = vpop.f32.mrf.mxu0 }
  0xed   : > { %v591_v0 = vadd.f32 %v1561_v56, %v590_v60 }
  0xee   : > { %v672_v62 = vmax.f32 %v633_v59, 0.0 }
  0xef   : > { %v655_v4 = vmax.f32 %v591_v0, 0.0 }
  0xf0   : > { %v690_v63 = vpack.c.bf16 %v672_v62, %v671_v61 }
  0xf2   : > { %1203 = vmatmul.msk.bf16.gmra.mxu2 %vm729_vm1, %v690_v63 }
  0xf3   : > { %v635_v1 = vpop.f32.mrf.mxu3 }
  0xf4   : > { %v592_v2 = vpop.f32.mrf.mxu0  ;;  %v636_v8 = vadd.f32 %v1561_v56, %v635_v1 }
  0xf5   : > { %v593_v3 = vadd.f32 %v1561_v56, %v592_v2 }
  0xf6   : > { %v673_v12 = vmax.f32 %v636_v8, 0.0 }
  0xf7   : > { %v656_v5 = vmax.f32 %v593_v3, 0.0 }
  0xf9   : > { %v682_v7 = vpack.c.bf16 %v656_v5, %v655_v4 }
  0xfb   : > { %v637_v9 = vpop.f32.mrf.mxu3  ;;  %1195 = vmatmul.msk.bf16.gmra.mxu1 %vm729_vm1, %v682_v7 }
  0xfc   : > { %v638_v10 = vadd.f32 %v1561_v56, %v637_v9  ;;  %v595_v11 = vpop.f32.mrf.mxu0 }
  0xfd   : > { %v596_v15 = vadd.f32 %v1561_v56, %v595_v11 }
  0xfe   : > { %v674_v13 = vmax.f32 %v638_v10, 0.0 }
  0xff   : > { %v657_v19 = vmax.f32 %v596_v15, 0.0 }
 0x100   : > { %v691_v14 = vpack.c.bf16 %v674_v13, %v673_v12 }
 0x102   : > { %1204 = vmatmul.msk.bf16.gmra.mxu2 %vm729_vm1, %v691_v14 }
 0x103   : > { %v640_v16 = vpop.f32.mrf.mxu3 }
 0x104   : > { %v597_v17 = vpop.f32.mrf.mxu0  ;;  %v641_v22 = vadd.f32 %v1561_v56, %v640_v16 }
 0x105   : > { %v598_v18 = vadd.f32 %v1561_v56, %v597_v17 }
 0x106   : > { %v675_v26 = vmax.f32 %v641_v22, 0.0 }
 0x107   : > { %v658_v20 = vmax.f32 %v598_v18, 0.0 }
 0x109   : > { %v683_v21 = vpack.c.bf16 %v658_v20, %v657_v19 }
 0x10b   : > { %v642_v23 = vpop.f32.mrf.mxu3  ;;  %1196 = vmatmul.msk.bf16.gmra.mxu1 %vm729_vm1, %v683_v21 }
 0x10c   : > { %v643_v24 = vadd.f32 %v1561_v56, %v642_v23  ;;  %v600_v25 = vpop.f32.mrf.mxu0 }
 0x10d   : > { %v601_v29 = vadd.f32 %v1561_v56, %v600_v25 }
 0x10e   : > { %v676_v27 = vmax.f32 %v643_v24, 0.0 }
 0x10f   : > { %v659_v32 = vmax.f32 %v601_v29, 0.0 }
 0x110   : > { %v692_v28 = vpack.c.bf16 %v676_v27, %v675_v26 }
 0x112   : > { %1205 = vmatmul.msk.bf16.gmra.mxu2 %vm729_vm1, %v692_v28 }
 0x114   : > { %v602_v30 = vpop.f32.mrf.mxu0 }
 0x115   : > { %v603_v31 = vadd.f32 %v1561_v56, %v602_v30 }
 0x117   : > { %v660_v33 = vmax.f32 %v603_v31, 0.0 }
 0x119   : > { %v684_v34 = vpack.c.bf16 %v660_v33, %v659_v32 }
 0x11b   : > { %1197 = vmatmul.msk.bf16.gmra.mxu1 %vm729_vm1, %v684_v34 }
 0x11c   : > { %v605_v35 = vpop.f32.mrf.mxu0 }
 0x11d   : > { %v606_v36 = vadd.f32 %v1561_v56, %v605_v35 }
 0x11f   : > { %v661_v38 = vmax.f32 %v606_v36, 0.0 }
 0x124   : > { %v607_v37 = vpop.f32.mrf.mxu0 }
 0x125   : > { %v608_v39 = vadd.f32 %v1561_v56, %v607_v37 }
 0x127   : > { %v662_v40 = vmax.f32 %v608_v39, 0.0 }
 0x128   : > { %v787_v41 = vpop.f32.mrf.mxu1 }
 0x129   : > { %v685_v42 = vpack.c.bf16 %v662_v40, %v661_v38  ;;  %v788_v44 = vadd.f32 %v1615_v43, %v787_v41 }
 0x12b   : > { %1198 = vmatmul.msk.bf16.gmra.mxu1 %vm729_vm1, %v685_v42  ;;  %v867_v47 = vmax.f32 %v788_v44, 0.0 }
 0x130   : > { %v789_v45 = vpop.f32.mrf.mxu1 }
 0x131   : > { %v790_v46 = vadd.f32 %v1615_v43, %v789_v45 }
 0x133   : > { %v868_v48 = vmax.f32 %v790_v46, 0.0 }
 0x135   : > { %v1620_v49 = vpack.c.bf16 %v868_v48, %v867_v47 }
 0x138   : > { %v792_v56 = vpop.f32.mrf.mxu1 }
 0x139   : > { %v793_v50 = vadd.f32 %v1615_v43, %v792_v56 }
 0x13b   : > { %1199 = vmatmul.msk.bf16.gmra.mxu1 %vm729_vm1, %v1569_v6  ;;  %v869_v53 = vmax.f32 %v793_v50, 0.0 }
 0x140   : > { %v794_v51 = vpop.f32.mrf.mxu1 }
 0x141   : > { %v795_v52 = vadd.f32 %v1615_v43, %v794_v51 }
 0x143   : > { %v870_v54 = vmax.f32 %v795_v52, 0.0 }
 0x145   : > { %v837_v55 = vpop.f32.mrf.mxu2  ;;  %v1626_v57 = vpack.c.bf16 %v870_v54, %v869_v53 }
 0x146   : > { %v838_v59 = vadd.f32 %v1615_v43, %v837_v55 }
 0x148   : > { %v797_v58 = vpop.f32.mrf.mxu1  ;;  %v887_v63 = vmax.f32 %v838_v59, 0.0 }
 0x149   : > { %v798_v62 = vadd.f32 %v1615_v43, %v797_v58 }
 0x14b   : > { %v871_v3 = vmax.f32 %v798_v62, 0.0 }
 0x14d   : > { %v839_v60 = vpop.f32.mrf.mxu2 }
 0x14e   : > { %v840_v61 = vadd.f32 %v1615_v43, %v839_v60 }
 0x150   : > { %v888_v6 = vmax.f32 %v840_v61, 0.0  ;;  %v799_v0 = vpop.f32.mrf.mxu1 }
 0x151   : > { %v800_v1 = vadd.f32 %v1615_v43, %v799_v0 }
 0x152   : > { %v1632_v2 = vpack.c.bf16 %v888_v6, %v887_v63 }
 0x153   : > { %v872_v4 = vmax.f32 %v800_v1, 0.0 }
 0x155   : > { %v842_v5 = vpop.f32.mrf.mxu2  ;;  %v1634_v7 = vpack.c.bf16 %v872_v4, %v871_v3 }
 0x156   : > { %v843_v9 = vadd.f32 %v1615_v43, %v842_v5 }
 0x158   : > { %v802_v8 = vpop.f32.mrf.mxu1  ;;  %v889_v13 = vmax.f32 %v843_v9, 0.0 }
 0x159   : > { %v803_v12 = vadd.f32 %v1615_v43, %v802_v8 }
 0x15b   : > { %v873_v18 = vmax.f32 %v803_v12, 0.0 }
 0x15d   : > { %v844_v10 = vpop.f32.mrf.mxu2 }
 0x15e   : > { %v845_v11 = vadd.f32 %v1615_v43, %v844_v10 }
 0x160   : > { %v890_v14 = vmax.f32 %v845_v11, 0.0  ;;  %v804_v15 = vpop.f32.mrf.mxu1 }
 0x161   : > { %v805_v16 = vadd.f32 %v1615_v43, %v804_v15 }
 0x162   : > { %v1640_v17 = vpack.c.bf16 %v890_v14, %v889_v13 }
 0x163   : > { %v874_v19 = vmax.f32 %v805_v16, 0.0 }
 0x165   : > { %v847_v20 = vpop.f32.mrf.mxu2  ;;  %v1642_v21 = vpack.c.bf16 %v874_v19, %v873_v18 }
 0x166   : > { %v848_v23 = vadd.f32 %v1615_v43, %v847_v20 }
 0x168   : > { %v807_v22 = vpop.f32.mrf.mxu1  ;;  %v891_v27 = vmax.f32 %v848_v23, 0.0 }
 0x169   : > { %v808_v26 = vadd.f32 %v1615_v43, %v807_v22 }
 0x16b   : > { %v875_v32 = vmax.f32 %v808_v26, 0.0 }
 0x16d   : > { %v849_v24 = vpop.f32.mrf.mxu2 }
 0x16e   : > { %v850_v25 = vadd.f32 %v1615_v43, %v849_v24 }
 0x170   : > { %v892_v28 = vmax.f32 %v850_v25, 0.0  ;;  %v809_v29 = vpop.f32.mrf.mxu1 }
 0x171   : > { %v810_v30 = vadd.f32 %v1615_v43, %v809_v29 }
 0x172   : > { %v911_v31 = vpack.c.bf16 %v892_v28, %v891_v27 }
 0x173   : > { %v876_v33 = vmax.f32 %v810_v30, 0.0 }
 0x174   : > { %v963_v29 = vsel %vm729_vm1, %v911_v31, 0 }
 0x175   : > { %v852_v34 = vpop.f32.mrf.mxu2  ;;  %v903_v35 = vpack.c.bf16 %v876_v33, %v875_v32  ;;  %v960_v32 = vsel %vm729_vm1, %v1640_v17, 0 }
 0x176   : > { %v853_v11 = vadd.f32 %v1615_v43, %v852_v34  ;;  %v936_v34 = vsel %vm729_vm1, %v1642_v21, 0 }
 0x177   : > { %v939_v30 = vsel %vm729_vm1, %v903_v35, 0  ;;  %v957_v35 = vsel %vm729_vm1, %v1632_v2, 0  ;;  %v930_v2 = vsel %vm729_vm1, %v1626_v57, 0 }
 0x178   : > { %v812_v36 = vpop.f32.mrf.mxu1  ;;  %v893_v18 = vmax.f32 %v853_v11, 0.0 }
 0x179   : > { %v813_v16 = vadd.f32 %v1615_v43, %v812_v36  ;;  %v916_v36 = vld [vmem:[#allocation2] sm:$0x1] }
 0x17b   : > { %v877_v23 = vmax.f32 %v813_v16, 0.0 }
 0x17d   : > { %v854_v37 = vpop.f32.mrf.mxu2 }
 0x17e   : > { %v855_v5 = vadd.f32 %v1615_v43, %v854_v37 }
 0x180   : > { %v814_v38 = vpop.f32.mrf.mxu1  ;;  %v894_v14 = vmax.f32 %v855_v5, 0.0 }
 0x181   : > { %v815_v12 = vadd.f32 %v1615_v43, %v814_v38  ;;  %v1352_v38 = vmov 0  }
 0x182   : > { %v912_v22 = vpack.c.bf16 %v894_v14, %v893_v18  ;;  %1266 = vset.pattern.permute.xlu0 %v1352_v38 }
 0x183   : > { %v878_v19 = vmax.f32 %v815_v12, 0.0  ;;  %919 = vperm.xlu0 %1266, %v916_v36   ;;  %v1044_v12 = vlaneseq }
 0x184   : > { %v966_v26 = vsel %vm729_vm1, %v912_v22, 0 }
 0x185   : > { %v857_v39 = vpop.f32.mrf.mxu2  ;;  %v904_v25 = vpack.c.bf16 %v878_v19, %v877_v23  ;;  %vm1046_vm11 = vcmp.lt.s32.totalorder %v1044_v12, 256 }
 0x186   : > { %v858_v55 = vadd.f32 %v1615_v43, %v857_v39 }
 0x187   : > { %v942_v27 = vsel %vm729_vm1, %v904_v25, 0 }
 0x188   : > { %v817_v40 = vpop.f32.mrf.mxu1  ;;  %v895_v1 = vmax.f32 %v858_v55, 0.0 }
 0x189   : > { %v818_v6 = vadd.f32 %v1615_v43, %v817_v40  ;;  %v933_v40 = vsel %vm729_vm1, %v1634_v7, 0  ;;  %v927_v7 = vsel %vm729_vm1, %v1620_v49, 0 }
 0x18b   : > { %v879_v10 = vmax.f32 %v818_v6, 0.0 }
 0x18d   : > { %v859_v41 = vpop.f32.mrf.mxu2 }
 0x18e   : > { %v860_v50 = vadd.f32 %v1615_v43, %v859_v41 }
 0x190   : > { %v819_v42 = vpop.f32.mrf.mxu1  ;;  %v896_v62 = vmax.f32 %v860_v50, 0.0 }
 0x191   : > { %v820_v59 = vadd.f32 %v1615_v43, %v819_v42 }
 0x192   : > { %v913_v9 = vpack.c.bf16 %v896_v62, %v895_v1 }
 0x193   : > { %v880_v3 = vmax.f32 %v820_v59, 0.0 }
 0x194   : > { %v969_v15 = vsel %vm729_vm1, %v913_v9, 0 }
 0x195   : > { %v862_v44 = vpop.f32.mrf.mxu2  ;;  %v905_v13 = vpack.c.bf16 %v880_v3, %v879_v10 }
 0x196   : > { %v863_v46 = vadd.f32 %v1615_v43, %v862_v44 }
 0x197   : > { %v945_v20 = vsel %vm729_vm1, %v905_v13, 0 }
 0x198   : > { %v822_v45 = vpop.f32.mrf.mxu1  ;;  %v897_v51 = vmax.f32 %v863_v46, 0.0 }
 0x199   : > { %v823_v56 = vadd.f32 %v1615_v43, %v822_v45 }
 0x19b   : > { %v881_v60 = vmax.f32 %v823_v56, 0.0 }
 0x19d   : > { %v864_v47 = vpop.f32.mrf.mxu2 }
 0x19e   : > { %v865_v48 = vadd.f32 %v1615_v43, %v864_v47 }
 0x1a0   : > { %v898_v52 = vmax.f32 %v865_v48, 0.0  ;;  %v824_v53 = vpop.f32.mrf.mxu1 }
 0x1a1   : > { %v825_v54 = vadd.f32 %v1615_v43, %v824_v53 }
 0x1a2   : > { %v914_v58 = vpack.c.bf16 %v898_v52, %v897_v51 }
 0x1a3   : > { %v882_v61 = vmax.f32 %v825_v54, 0.0 }
 0x1a4   : > { %v972_v63 = vsel %vm729_vm1, %v914_v58, 0 }
 0x1a5   : > { %987 = vmatpush.bf16.xpose.msrb.mxu3 %v972_v63  ;;  %v906_v0 = vpack.c.bf16 %v882_v61, %v881_v60 }
 0x1a7   : > { %v948_v4 = vsel %vm729_vm1, %v906_v0, 0 }
 0x1a8   : > { %v827_v8 = vpop.f32.mrf.mxu1  ;;  %974 = vmatpush.bf16.xpose.msrb.mxu2 %v948_v4 }
 0x1a9   : > { %v828_v42 = vadd.f32 %v1615_v43, %v827_v8 }
 0x1ab   : > { %v883_v46 = vmax.f32 %v828_v42, 0.0 }
 0x1ad   : > { %988 = vmatpush.bf16.xpose.msrb.mxu3 %v969_v15 }
 0x1b0   : > { %975 = vmatpush.bf16.xpose.msrb.mxu2 %v945_v20  ;;  %v829_v24 = vpop.f32.mrf.mxu1 }
 0x1b1   : > { %v830_v21 = vadd.f32 %v1615_v43, %v829_v24 }
 0x1b3   : > { %v884_v44 = vmax.f32 %v830_v21, 0.0 }
 0x1b5   : > { %989 = vmatpush.bf16.xpose.msrb.mxu3 %v966_v26  ;;  %v907_v47 = vpack.c.bf16 %v884_v44, %v883_v46 }
 0x1b7   : > { %v951_v48 = vsel %vm729_vm1, %v907_v47, 0 }
 0x1b8   : > { %976 = vmatpush.bf16.xpose.msrb.mxu2 %v942_v27  ;;  %v832_v28 = vpop.f32.mrf.mxu1 }
 0x1b9   : > { %v833_v31 = vadd.f32 %v1615_v43, %v832_v28 }
 0x1bb   : > { %v885_v17 = vmax.f32 %v833_v31, 0.0 }
 0x1bd   : > { %990 = vmatpush.bf16.xpose.msrb.mxu3 %v963_v29 }
 0x1c0   : > { %977 = vmatpush.bf16.xpose.msrb.mxu2 %v939_v30  ;;  %v834_v33 = vpop.f32.mrf.mxu1 }
 0x1c1   : > { %v835_v37 = vadd.f32 %v1615_v43, %v834_v33  ;;  %v915_v43 = vld [vmem:[%s1757_s6] sm:$0x1] }
 0x1c3   : > { %v886_v39 = vmax.f32 %v835_v37, 0.0 }
 0x1c5   : > { %991 = vmatpush.bf16.xpose.msrb.mxu3 %v960_v32  ;;  %v908_v41 = vpack.c.bf16 %v886_v39, %v885_v17 }
 0x1c7   : > { %v954_v45 = vsel %vm729_vm1, %v908_v41, 0 }
 0x1c8   : > { %978 = vmatpush.bf16.xpose.msrb.mxu2 %v936_v34 }
 0x1cd   : > { %992 = vmatpush.bf16.xpose.msrb.mxu3 %v957_v35 }
 0x1d0   : > { %979 = vmatpush.bf16.xpose.msrb.mxu2 %v933_v40 }
 0x1d5   : > { %993 = vmatpush.bf16.xpose.msrb.mxu3 %v954_v45 }
 0x1d8   : > { %980 = vmatpush.bf16.xpose.msrb.mxu2 %v930_v2 }
 0x1dd   : > { %994 = vmatpush.bf16.xpose.msrb.mxu3 %v951_v48 }
 0x1e0   : > { %981 = vmatpush.bf16.xpose.msrb.mxu2 %v927_v7 }
 0x1e4   : > { %1207 = vmatmul.msk.bf16.vlgmr.msrb.gmra.mxu3 %vm729_vm1, %v915_v43 }
 0x1e7   : > { %1206 = vmatmul.msk.bf16.vlgmr.msrb.gmra.mxu2 %vm729_vm1, %v915_v43 }
 0x1f5   : > { %v920_v56 = vpop.permute.xlu0 %919 }
 0x1f6   : > { %v922_v57 = vperm.slane %v920_v56, 0 }
 0x267   : > { %v996_v50 = vpop.f32.mrf.mxu3 }
 0x268   : > { %v997_v51 = vadd.f32 %v996_v50, %v922_v57 }
 0x26a   : > { %v1209_v52 = vmul.f32 -1.442695, %v997_v51  ;;  %v983_v53 = vpop.f32.mrf.mxu2 }
 0x26b   : > { %v984_v54 = vadd.f32 %v983_v53, %v922_v57 }
 0x26c   : > { %1269 = vpow2.f32 %v1209_v52 }
 0x26d   : > { %v1208_v55 = vmul.f32 -1.442695, %v984_v54 }
 0x26f   : > { %1271 = vpow2.f32 %v1208_v55  ;;  %v998_v49 = vpop.f32.mrf.mxu3 }
 0x272   : > { %v1270_v58 = vpop.eup %1269  ;;  %v985_v59 = vpop.f32.mrf.mxu2 }
 0x273   : > { %v1007_v60 = vadd.f32 1.0, %v1270_v58 }
 0x275   : > { %v1272_v61 = vpop.eup %1271  ;;  %1273 = vrcp.f32 %v1007_v60  ;;  %v1034_v3 = vand.u32 2147483648, %v1007_v60  ;;  %v1032_v8 = vand.u32 2147483647, %v1007_v60  ;;  %vm1028_vm3 = vweird.f32 %v1007_v60 }
 0x276   : > { %v1006_v62 = vadd.f32 1.0, %v1272_v61 }
 0x277   : > { %v1035_v13 = vor.u32 1.1754944e-38, %v1034_v3  ;;  %vm1033_vm6 = vcmp.eq.f32.partialorder %v1032_v8, 8.507059e+37 }
 0x278   : > { %1275 = vrcp.f32 %v1006_v62  ;;  %v1019_v11 = vand.u32 2147483648, %v1006_v62  ;;  %v1017_v15 = vand.u32 2147483647, %v1006_v62  ;;  %vm1013_vm7 = vweird.f32 %v1006_v62 }
 0x27a   : > { %v1020_v20 = vor.u32 1.1754944e-38, %v1019_v11  ;;  %vm1018_vm10 = vcmp.eq.f32.partialorder %v1017_v15, 8.507059e+37 }
 0x27b   : > { %v1274_v63 = vpop.eup %1273 }
 0x27c   : > { %v1024_v6 = vmul.f32 %v1274_v63, %v1007_v60  ;;  %vm1029_vm2 = vweird.f32 %v1274_v63 }
 0x27d   : > { %vm1030_vm4 = vmor %vm1028_vm3, %vm1029_vm2 }
 0x27e   : > { %v1276_v0 = vpop.eup %1275  ;;  %v1025_v1 = vsub.f32 1.0, %v1024_v6 }
 0x27f   : > { %v1009_v4 = vmul.f32 %v1276_v0, %v1006_v62  ;;  %vm1014_vm5 = vweird.f32 %v1276_v0 }
 0x280   : > { %v1026_v5 = vmul.f32 %v1274_v63, %v1025_v1  ;;  %vm1015_vm8 = vmor %vm1013_vm7, %vm1014_vm5 }
 0x281   : > { %v1010_v9 = vsub.f32 1.0, %v1009_v4 }
 0x282   : > { %v1027_v10 = vadd.f32 %v1274_v63, %v1026_v5 }
 0x283   : > { %v1011_v14 = vmul.f32 %v1276_v0, %v1010_v9 }
 0x284   : > { %v1031_v16 = vsel %vm1030_vm4, %v1274_v63, %v1027_v10 }
 0x285   : > { %v1036_v18 = vsel %vm1033_vm6, %v1035_v13, %v1031_v16  ;;  %v1012_v19 = vadd.f32 %v1276_v0, %v1011_v14 }
 0x286   : > { %v1040_v22 = vrot.slane %v1036_v18, 7  ;;  %1056 = sbr.rel (!%p1440_p5) target bundleno = 680 (0x2a8), region = 56 }
 0x287   : > { %v1016_v23 = vsel %vm1015_vm8, %v1276_v0, %v1012_v19 }
 0x288   : > { %v1021_v24 = vsel %vm1018_vm10, %v1020_v20, %v1016_v23 }
 0x289   : > { %v1042_v25 = vsel %vm1041_vm9, %v1021_v24, %v1040_v22 }
 0x28a   : > { %1048 = vst.msk [vmem:[%s341_s18] sm:$0x3] %vm1046_vm11, %v1042_v25 }
 0x28b   : > { %s1769_s21 = smov (!%p1059_p11, %s1058_s21), 2 }
 0x28c   : > { %s1061_s22 = ssub.s32 2, %s1769_s21 }
 0x28d   : > { %s1062_s23 = sshll.u32 %s1061_s22, 4 }
 0x28e   : > { %1063 = vsyncadd %s1696_s19, %s1062_s23  ;;  %p1212_p12 = scmp.ne.s32.totalorder %s1769_s21, 0  ;;  %s1065_s16 = scalar_lea.hbm %s1759_s8, %s1211_s20 }
 0x28f   : > { %s1066_s26 = sshll.u32 %s1769_s21, 4  ;;  %s1710_s27 = sshll.u32 %s341_s18, 4  ;;  %s1068_s27 = int_to_ptr.vmem [resolvable:$true] %s1710_s27 }
 0x290   : > { %s1069_s7 = sshll.u32 %s1065_s16, 4  ;;  %s1277_s28 = sshra.s32 %s1068_s27, 4  ;;  %s1070_s7 = int_to_ptr.hbm [resolvable:$true] %s1069_s7  ;;  %s1278_s28 = int_to_ptr.vmem [resolvable:$true] %s1277_s28 }
 0x291   : > { %s1279_s11 = sshrl.u32 %s1066_s26, 4  ;;  %s1353_s14 = smov [#allocation3]  }
 0x292   : > { %s1284_s13 = scalar_lea.vmem %s1278_s28, %s1279_s11  ;;  %s1288_s20 = scalar_lea.vmem %s1353_s14, 4 }
 0x293   : > { %p1285_p13 = scmp.ne.s32.totalorder %s1278_s28, %s1284_s13  ;;  %p1290_p2 = scmp.lt.s32.totalorder %s1288_s20, %s1284_s13 }
 0x295   : > { %p1286_p0 = pnand %p1285_p13, %p1212_p12 }
 0x297   : > { %p1287_p1 = pneg %p1286_p0 }
 0x299   : > { %p1292_p3 = pnand %p1290_p2, %p1287_p1 }
 0x29b   : > { %1295 = shalt.err (!%p1292_p3)
}
 0x29c   : > { %s1296_s18 = sshra.s32 %s1070_s7, 4  ;;  %s1307_s25 = scalar_lea.hbm %s1759_s8, 3  ;;  %s1297_s18 = int_to_ptr.hbm [resolvable:$true] %s1296_s18 }
 0x29d   : > { %s1303_s22 = scalar_lea.hbm %s1297_s18, %s1279_s11  ;;  %p1308_p8 = scmp.lt.s32.totalorder %s1297_s18, %s1759_s8 }
 0x29e   : > { %p1304_p4 = scmp.ne.s32.totalorder %s1297_s18, %s1303_s22  ;;  %p1309_p9 = scmp.lt.s32.totalorder %s1307_s25, %s1303_s22 }
 0x2a0   : > { %p1305_p5 = pnand %p1304_p4, %p1212_p12  ;;  %p1310_p10 = por %p1309_p9, %p1308_p8 }
 0x2a2   : > { %p1306_p7 = pneg %p1305_p5 }
 0x2a4   : > { %p1311_p11 = pnand %p1310_p10, %p1306_p7 }
 0x2a6   : > { %1314 = shalt.err (!%p1311_p11)
}
 0x2a7   : > { %1072 = dma.vmem_to_hbm [thread:$0]  (%p1212_p12), %s1068_s27, %s1066_s26, %s1070_s7, %s1696_s19  }
 0x2a8 PF: > { %p1232_p13 = scmp.ge.s32.totalorder %s1350_s10, 2  ;;  %s1081_s11 = sand.u32 1, %s1338_s29  }
 0x2a9   : > { %s1082_s13 = scalar_lea.sflag [#allocation4], %s1081_s11 }
 0x2aa   : > { %p1229_p0 = pnand %p1232_p13, %p1444_p6 }
 0x2ac   : > { %p1230_p1 = pneg %p1229_p0 }
 0x2ae   : > { %1333 = dma.done.wait (%p1230_p1), %s1082_s13, 32  }
 0x2af   : > { %1335 = vsyncadd (%p1230_p1), %s1082_s13, 4294967264  ;;  %p20_p2 = scmp.ge.s32.totalorder %s1427_s12, 4   ;;  %s1762_s29 = smov %s1342_s30 }
 0x2b0   : > { %s1763_s30 = smov %s1346_s9  ;;  %s1764_s9 = smov %s1438_s15 }
 0x2b1   : > { %s1765_s10 = smov %s1427_s12  ;;  %22 = sbr.rel (!%p20_p2) target bundleno = 6 (0x6), region = 90 }
 0x2b6   :  { %1088 = vsyncpa [#allocation4], 1 }
 0x2b7   :  { %1090 = vsyncpa [#allocation4 + $0x1], 1 }

</bundles_post_ra>
